<compile_context>
chip_gen: v5e
topology: v5e:2x2
jax: 0.10.0
libtpu: 0.0.40
codegen_flags: <defaults>
</compile_context>

<pallas_src>
import math

import jax
import jax.numpy as jnp
from jax import lax
from jax.experimental import pallas as pl
from jax.experimental.pallas import tpu as pltpu

PAD = 0


def _sinusoid_signal(length, channels, min_timescale=1.0, max_timescale=10000.0,
                     dtype=jnp.float32):
    """Matches Embeddings._add_pos_embedding: (length, channels) = [sin | cos]."""
    assert channels % 2 == 0
    num_timescales = channels // 2
    log_timescale_increment = (math.log(float(max_timescale) / float(min_timescale))
                               / (float(num_timescales) - 1.0))
    inv_timescales = float(min_timescale) * jnp.exp(
        jnp.arange(num_timescales, dtype=jnp.float32) * -log_timescale_increment)
    position = jnp.arange(length, dtype=jnp.float32)
    scaled_time = position[:, None] * inv_timescales[None, :]
    signal = jnp.concatenate([jnp.sin(scaled_time), jnp.cos(scaled_time)], axis=1)
    return signal.astype(dtype)


def embeddings_forward(token_ids, emb_table, *, add_position_embedding=True,
                       min_timescale=1.0, max_timescale=10000.0, tile_rows=256):
    """token_ids: (batch, seq) int. emb_table: (vocab, dim). Returns (batch, seq, dim)."""
    batch, seq = token_ids.shape
    vocab, dim = emb_table.shape
    N = batch * seq
    dtype = emb_table.dtype
    itemsize = jnp.dtype(dtype).itemsize

    # When add_position_embedding is False the module neither scales nor adds a signal.
    scale = float(dim) ** 0.5 if add_position_embedding else 1.0
    if add_position_embedding:
        signal = _sinusoid_signal(seq, dim, min_timescale, max_timescale, dtype)
    else:
        signal = jnp.zeros((seq, dim), dtype)

    # Large row tiles amortize the ~0.35us per-grid-step overhead; keep them a multiple of the
    # f32 sublane count (8) and pad N so every tile is full (padded rows look up row PAD and are
    # sliced off afterwards -> no OOB reads of the SMEM id array).
    tm = max(8, min(int(tile_rows), ((N + 7) // 8) * 8))
    n_pad = ((N + tm - 1) // tm) * tm

    ids_flat = token_ids.reshape(N).astype(jnp.int32)
    sig_rows = jnp.tile(signal, (batch, 1))
    if n_pad != N:
        ids_flat = jnp.pad(ids_flat, (0, n_pad - N))
        sig_rows = jnp.pad(sig_rows, ((0, n_pad - N), (0, 0)))

    def kernel(ids_ref, table_ref, sig_ref, o_ref):
        i = pl.program_id(0)
        base = i * tm

        def gather_row(r, carry):
            tok = ids_ref[base + r]
            o_ref[pl.ds(r, 1), :] = table_ref[pl.ds(tok, 1), :]
            return carry

        lax.fori_loop(0, tm, gather_row, 0)
        # Vectorized scale + positional add over the whole lane-dense (tm, dim) tile.
        o_ref[...] = o_ref[...] * scale + sig_ref[...]

    grid = (n_pad // tm,)

    # VMEM budget: table (possibly double-buffered) + double-buffered signal & output tiles.
    footprint = (2 * vocab * dim + 2 * tm * dim + 2 * tm * dim) * itemsize
    vmem_limit = int(min(64 * 1024 * 1024, max(16 * 1024 * 1024, 2 * footprint)))

    bytes_accessed = int(ids_flat.size * 4 + emb_table.size * itemsize
                         + sig_rows.size * itemsize + n_pad * dim * itemsize)

    out = pl.pallas_call(
        kernel,
        out_shape=jax.ShapeDtypeStruct((n_pad, dim), dtype),
        grid_spec=pltpu.PrefetchScalarGridSpec(
            num_scalar_prefetch=1,
            grid=grid,
            in_specs=[
                pl.BlockSpec((vocab, dim), lambda i, ids: (0, 0)),  # full table, VMEM-resident
                pl.BlockSpec((tm, dim), lambda i, ids: (i, 0)),     # positional signal rows
            ],
            out_specs=pl.BlockSpec((tm, dim), lambda i, ids: (i, 0)),
        ),
        compiler_params=pltpu.CompilerParams(
            dimension_semantics=("parallel",),
            vmem_limit_bytes=vmem_limit,
        ),
        cost_estimate=pl.CostEstimate(
            flops=2 * N * dim, transcendentals=0, bytes_accessed=bytes_accessed),
    )(ids_flat, emb_table, sig_rows)

    return out[:N].reshape(batch, seq, dim)


def reference_embeddings(token_ids, emb_table, add_position_embedding=True):
    emb = emb_table[token_ids]                    # (B, S, D) gather
    if add_position_embedding:
        dim = emb_table.shape[1]
        emb = emb * (float(dim) ** 0.5)
        sig = _sinusoid_signal(token_ids.shape[1], dim, dtype=emb.dtype)
        emb = emb + sig[None, :, :]
    return emb


if __name__ == "__main__":
    # Small shapes consistent with the module; dim is a multiple of 128 for lane-dense stores.
    batch, seq = 2, 8
    vocab, dim = 32, 128

    key = jax.random.PRNGKey(0)
    k_ids, k_tab = jax.random.split(key)

    inv_scale = 1.0 / (dim ** 0.5)
    table = jax.random.uniform(k_tab, (vocab, dim), minval=-inv_scale, maxval=inv_scale,
                               dtype=jnp.float32)
    table = table.at[PAD].set(0.0)  # reset_parameters(): zero the padding_idx row

    token_ids = jax.random.randint(k_ids, (batch, seq), 0, vocab, dtype=jnp.int32)
    token_ids = token_ids.at[0, -2:].set(PAD)  # include some PAD tokens

    out = embeddings_forward(token_ids, table)
    out = jax.block_until_ready(out)

    ref = reference_embeddings(token_ids, table)
    assert out.shape == (batch, seq, dim) and out.dtype == table.dtype
    assert jnp.allclose(out, ref, atol=1e-5, rtol=1e-5), float(jnp.max(jnp.abs(out - ref)))

    print("KERNEL_OK")
</pallas_src>

<mosaic_0001>
module attributes {stable_mosaic.version = 11 : i64} {
  func.func @kernel(%arg0: i32, %arg1: memref<16xi32, #tpu.memory_space<smem>>, %arg2: memref<32x128xf32, #tpu.memory_space<vmem>>, %arg3: memref<16x128xf32, #tpu.memory_space<vmem>>, %arg4: memref<16x128xf32, #tpu.memory_space<vmem>>) attributes {dimension_semantics = [#tpu.dimension_semantics<parallel>], iteration_bounds = array<i64: 1>, scalar_prefetch = 1 : i64, scratch_operands = 0 : i64, tpu.core_type = #tpu.core_type<tc>, window_params = [{pipeline_mode = #tpu.pipeline_mode<synchronous>, transform_indices = @transform_0, window_bounds = array<i64: 32, 128>}, {transform_indices = @transform_1, window_bounds = array<i64: 16, 128>}, {transform_indices = @transform_2, window_bounds = array<i64: 16, 128>}]} {
    %c16_i32 = arith.constant 16 : i32
    %0 = arith.muli %arg0, %c16_i32 : i32
    %c0_i32 = arith.constant 0 : i32
    %c16_i32_0 = arith.constant 16 : i32
    %1 = arith.addi %c0_i32, %c16_i32_0 : i32
    %c1_i32 = arith.constant 1 : i32
    scf.for %arg5 = %c0_i32 to %1 step %c1_i32  : i32 {
      %8 = arith.addi %0, %arg5 : i32
      %9 = arith.index_cast %8 : i32 to index
      %10 = memref.load %arg1[%9] : memref<16xi32, #tpu.memory_space<smem>>
      %11 = arith.index_cast %10 : i32 to index
      %c0_7 = arith.constant 0 : index
      %12 = vector.load %arg2[%11, %c0_7] : memref<32x128xf32, #tpu.memory_space<vmem>>, vector<1x128xf32>
      %13 = arith.index_cast %arg5 : i32 to index
      %c0_8 = arith.constant 0 : index
      %14 = vector.load %arg4[%13, %c0_8] : memref<16x128xf32, #tpu.memory_space<vmem>>, vector<1x128xf32>
      tpu.vector_store %arg4[%13, %c0_8], %12 {strides = array<i32>} : memref<16x128xf32, #tpu.memory_space<vmem>>, vector<1x128xf32>,
    }
    %c16_i32_1 = arith.constant 16 : i32
    %c0 = arith.constant 0 : index
    %c0_2 = arith.constant 0 : index
    %2 = vector.load %arg4[%c0, %c0_2] : memref<16x128xf32, #tpu.memory_space<vmem>>, vector<16x128xf32>
    %cst = arith.constant 11.3137083 : f32
    %3 = vector.broadcast %cst : f32 to vector<16x128xf32>
    %4 = arith.mulf %2, %3 : vector<16x128xf32>
    %c0_3 = arith.constant 0 : index
    %c0_4 = arith.constant 0 : index
    %5 = vector.load %arg3[%c0_3, %c0_4] : memref<16x128xf32, #tpu.memory_space<vmem>>, vector<16x128xf32>
    %6 = arith.addf %4, %5 : vector<16x128xf32>
    %c0_5 = arith.constant 0 : index
    %c0_6 = arith.constant 0 : index
    %7 = vector.load %arg4[%c0_5, %c0_6] : memref<16x128xf32, #tpu.memory_space<vmem>>, vector<16x128xf32>
    tpu.vector_store %arg4[%c0_5, %c0_6], %6 {strides = array<i32>} : memref<16x128xf32, #tpu.memory_space<vmem>>, vector<16x128xf32>,
    return
  }
  func.func @transform_0(%arg0: i32, %arg1: memref<16xi32, #tpu.memory_space<smem>>) -> (i32, i32) {
    %c0_i32 = arith.constant 0 : i32
    %c0_i32_0 = arith.constant 0 : i32
    %c0_i32_1 = arith.constant 0 : i32
    return %c0_i32, %c0_i32_0 : i32, i32
  }
  func.func @transform_1(%arg0: i32, %arg1: memref<16xi32, #tpu.memory_space<smem>>) -> (i32, i32) {
    %c0_i32 = arith.constant 0 : i32
    %c0_i32_0 = arith.constant 0 : i32
    return %arg0, %c0_i32 : i32, i32
  }
  func.func @transform_2(%arg0: i32, %arg1: memref<16xi32, #tpu.memory_space<smem>>) -> (i32, i32) {
    %c0_i32 = arith.constant 0 : i32
    %c0_i32_0 = arith.constant 0 : i32
    return %arg0, %c0_i32 : i32, i32
  }
}

</mosaic_0001>

<bundles_post_ra>
// kernel: tpu_custom_call.1
= control target key start
LH: loop header
LB: loop body
LE: loop exit
PB: predicated region body
PF: predicated region fallthrough
CT: control target
= control target key end

     0   :  { %s217_s15 = smov [#allocation3]   ;;  %s264_s0 = inlined_call_operand.hbm [shape: s32[16], index: 0, kind: input, shape index: {}]   ;;  %s265_s1 = inlined_call_operand.hbm [shape: f32[32,128], index: 1, kind: input, shape index: {}]   ;;  %s266_s2 = inlined_call_operand.hbm [shape: f32[16,128], index: 2, kind: input, shape index: {}]   ;;  %s267_s3 = inlined_call_operand.hbm [shape: f32[16,128], index: 3, kind: output, shape index: {}]  }
   0x1   :  { %s9_s14 = sshll.u32 %s264_s0, 4  ;;  %s10_s14 = int_to_ptr.hbm [resolvable:$true] %s9_s14 }
   0x2   :  { %12 = dma.hbm_to_smem %s10_s14, 16, %s217_s15, [#allocation2] }
   0x3   :  { %205 = dma.done.wait [#allocation2], 16 }
   0x4   :  { %206 = vsyncadd [#allocation2], 4294967280 }
   0x5   :  { %15 = sfence }
   0x6   :  { %16 = vsyncpa [#allocation5], 0 }
   0x7   :  { %17 = vsyncpa [#allocation8], 0 }
   0x8   :  { %18 = vsyncpa [#allocation6], 0  ;;  %s23_s18 = sshll.u32 %s265_s1, 4  ;;  %s218_s19 = smov [#allocation4]   ;;  %s24_s18 = int_to_ptr.hbm [resolvable:$true] %s23_s18 }
   0x9   :  { %s25_s20 = sshll.u32 %s218_s19, 4  ;;  %s36_s0 = sshll.u32 %s266_s2, 4  ;;  %s26_s20 = int_to_ptr.vmem [resolvable:$true] %s25_s20  ;;  %s37_s0 = int_to_ptr.hbm [resolvable:$true] %s36_s0 }
   0xa   :  { %s219_s23 = smov 128   ;;  %s220_s24 = smov 8  }
   0xb   :  { %31 = dma.hbm_to_vmem [thread:$0]  %s24_s18, 512, %s26_s20, [#allocation5], %s219_s23, %s219_s23, %s220_s24  }
   0xc   :  { %s221_s25 = smov [#allocation7]  }
   0xd   :  { %s38_s26 = sshll.u32 %s221_s25, 4  ;;  %s39_s26 = int_to_ptr.vmem [resolvable:$true] %s38_s26 }
   0xe   :  { %44 = dma.hbm_to_vmem [thread:$0]  %s37_s0, 256, %s39_s26, [#allocation8], %s219_s23, %s219_s23, %s220_s24  }
   0xf   :  { %207 = dma.done.wait [#allocation5], 512  }
  0x10   :  { %208 = vsyncadd [#allocation5], 4294966784 }
  0x11   :  { %209 = dma.done.wait [#allocation8], 256  }
  0x12   :  { %210 = vsyncadd [#allocation8], 4294967040  ;;  %s213_s1 = smov 0  }
  0x13 LB: > { %s61_s2 = sld [smem:[#allocation3 + %s215_s1]]  ;;  %s64_s28 = scalar_lea.vmem [#allocation9], %s215_s1  ;;  %s215_s1 = sphi %s213_s1, %s59_s1  }
  0x14   : > { %s59_s1 = sadd.s32 1, %s215_s1  }
  0x15   : > { %p56_p0 = scmp.ge.s32.totalorder %s59_s1, 16  }
  0x16   :  { %v70_v2 = vld [vmem:[#allocation7] sm:$0xff] (%p56_p0)  ;;  %s82_s4 = sshll.u32 (%p56_p0), %s267_s3, 4  ;;  %v71_v6 = vld [vmem:[#allocation7 + $0x8] sm:$0xff] (%p56_p0)  ;;  %s222_s5 = smov (%p56_p0), [#allocation9]   ;;  %s83_s4 = int_to_ptr.hbm [resolvable:$true] %s82_s4 }
  0x17   :  { %58 = sbr.rel (!%p56_p0) target bundleno = 19 (0x13), region = 45  ;;  %s80_s6 = sshll.u32 (%p56_p0), %s222_s5, 4  ;;  %s81_s6 = int_to_ptr.vmem [resolvable:$true] %s80_s6 }
  0x19   : > { %s62_s27 = scalar_lea.vmem [#allocation4], %s61_s2 }
  0x1a   : > { %v63_v0 = vld [vmem:[%s62_s27] sm:$0x1] }
  0x1b   : > { %65 = vst [vmem:[%s64_s28] sm:$0x1] %v63_v0 }
  0x22   :  { %v66_v1 = vld [vmem:[#allocation9] sm:$0xff]  ;;  %v67_v3 = vld [vmem:[#allocation9 + $0x8] sm:$0xff] }
  0x23   :  { %v68_v4 = vmul.f32 11.313708, %v66_v1  ;;  %v69_v5 = vmul.f32 11.313708, %v67_v3 }
  0x25   :  { %v72_v7 = vadd.f32 %v70_v2, %v68_v4  ;;  %v73_v8 = vadd.f32 %v71_v6, %v69_v5 }
  0x27   :  { %74 = vst [vmem:[#allocation9] sm:$0xff] %v72_v7 }
  0x28   :  { %75 = vst [vmem:[#allocation9 + $0x8] sm:$0xff] %v73_v8 }
  0x29   :  { %88 = dma.vmem_to_hbm [thread:$0]  %s81_s6, 256, %s83_s4, [#allocation6], %s219_s23, %s219_s23, %s220_s24  }
  0x2a   :  { %211 = dma.done.wait [#allocation6], 256  }
  0x2b   :  { %212 = vsyncadd [#allocation6], 4294967040 }
  0x2c   :  { %93 = vsyncpa [#allocation5], 1 }
  0x2d   :  { %94 = vsyncpa [#allocation8], 1 }
  0x2e   :  { %95 = vsyncpa [#allocation6], 1 }

</bundles_post_ra>
